<compile_context>
chip_gen: v7x
topology: tpu7x:2x2x1
jax: 0.10.0
libtpu: 0.0.40
codegen_flags: <defaults>
</compile_context>

<pallas_src>
import jax
import jax.numpy as jnp
from jax.experimental import pallas as pl
from jax.experimental.pallas import tpu as pltpu

HIDDEN = 32     # hidden_size
VOCAB = 64      # output_size
SEQ = 8         # decode steps fused into one kernel launch (demo)

OUT_W = ((VOCAB + 127) // 128) * 128   # lane-dense log-prob slab width (=128 here)
PAD = OUT_W - VOCAB


def _decoder_kernel(tok_ref,      # SMEM scalar prefetch: (T,) int32 token ids
                    emb_ref,      # (V, H)   embedding table, resident in VMEM
                    h0_ref,       # (1, H)   initial hidden
                    wg_ref,       # (2H, 3H) [W_i^T ; W_h^T], gate order (r|z|n)
                    bg_ref,       # (2, 3H)  row0 = [b_i_rz+b_h_rz | b_i_n], row1 = [0 | b_h_n]
                    wo_ref,       # (H, V)   out weight (pre-transposed)
                    bo_ref,       # (1, V)   out bias
                    logp_ref,     # out: (T, OUT_W) lane-dense [log_softmax | 0-pad]
                    hfin_ref):    # out: (1, H) final hidden state
    H = HIDDEN
    T = logp_ref.shape[0]
    f32 = jnp.float32

    # ---- Phase 0: gather all T embedding rows, relu, batched input-side gate matmul.
    # x_t does not depend on h, so this half of the GRU leaves the serial recurrence.
    rows = [emb_ref[pl.ds(tok_ref[t], 1), :] for t in range(T)]      # T x (1, H)
    x_all = jnp.maximum(jnp.concatenate(rows, axis=0), 0.0)          # (T, H)  relu(embedding)
    gi_all = jnp.dot(x_all, wg_ref[0:H, :],
                     preferred_element_type=f32) + bg_ref[0:1, :]    # (T, 3H)

    # ---- Phase 1: serial GRU recurrence; h stays vreg-resident across the unrolled loop.
    w_h = wg_ref[H:2 * H, :]       # (H, 3H)  hoisted load, resident for all steps
    b_hn = bg_ref[1:2, :]          # (1, 3H)  zeros except the n-gate slice
    h = h0_ref[...]                # (1, H)
    h_rows = []
    for t in range(T):             # T is small & static: fully unrolled at trace time
        gi = gi_all[t:t + 1, :]                                              # (1, 3H)
        gh = jnp.dot(h, w_h, preferred_element_type=f32) + b_hn              # (1, 3H)
        r = jax.nn.sigmoid(gi[:, 0:H] + gh[:, 0:H])
        z = jax.nn.sigmoid(gi[:, H:2 * H] + gh[:, H:2 * H])
        n = jnp.tanh(gi[:, 2 * H:3 * H] + r * gh[:, 2 * H:3 * H])
        h = (1.0 - z) * n + z * h                                            # (1, H)
        h_rows.append(h)

    # ---- Phase 2: batched output projection + log_softmax over all T steps at once.
    h_all = jnp.concatenate(h_rows, axis=0)                                  # (T, H)
    logits = jnp.dot(h_all, wo_ref[...],
                     preferred_element_type=f32) + bo_ref[...]               # (T, V)
    m = jnp.max(logits, axis=-1, keepdims=True)
    logp = logits - m - jnp.log(jnp.sum(jnp.exp(logits - m), axis=-1, keepdims=True))
    if PAD:
        logp = jnp.concatenate([logp, jnp.zeros((T, PAD), f32)], axis=-1)    # lane-dense 128
    logp_ref[...] = logp            # single (T, 128) store
    hfin_ref[...] = h               # final hidden, written once


def decoder_rnn_forward(tokens, hidden, params):
    """Run T fused DecoderRNN.forward steps (teacher-forced token sequence).

    tokens: (T,) int32 ; hidden: (1, 1, H).
    Returns (log_probs (T, V), final_hidden (1, 1, H)).  T=1 is exactly the module forward.
    """
    T = tokens.shape[0]
    H, V = HIDDEN, VOCAB
    h0 = hidden.reshape(1, H).astype(jnp.float32)

    # Host-side (tiny) bias pre-fold: r/z gates see gi+gh, so b_i_rz + b_h_rz collapse
    # into the batched gi bias; b_h_n stays separate because it is multiplied by r.
    b_i, b_h = params["b_gru"][0:1], params["b_gru"][1:2]
    b_gi = jnp.concatenate([b_i[:, :2 * H] + b_h[:, :2 * H], b_i[:, 2 * H:]], axis=-1)
    b_gh = jnp.concatenate([jnp.zeros((1, 2 * H), jnp.float32), b_h[:, 2 * H:]], axis=-1)
    bg = jnp.concatenate([b_gi, b_gh], axis=0).astype(jnp.float32)           # (2, 3H)

    const = lambda shape: pl.BlockSpec(shape, lambda i, tok: (0, 0))         # resident block
    in_specs = [
        const((V, H)),          # embedding table (resident, gathered in-kernel)
        const((1, H)),          # h0
        const((2 * H, 3 * H)),  # packed GRU weights
        const((2, 3 * H)),      # packed / pre-folded GRU biases
        const((H, V)),          # out weight
        const((1, V)),          # out bias
    ]
    out_specs = [
        pl.BlockSpec((T, OUT_W), lambda i, tok: (0, 0)),   # log-prob slab (written once)
        pl.BlockSpec((1, H), lambda i, tok: (0, 0)),       # final hidden (written once)
    ]

    grid_spec = pltpu.PrefetchScalarGridSpec(
        num_scalar_prefetch=1,          # tokens -> SMEM, read per-row inside the kernel
        grid=(1,),                      # single launch: all T steps fused in the body
        in_specs=in_specs,
        out_specs=out_specs,
        scratch_shapes=[],
    )
    fn = pl.pallas_call(
        _decoder_kernel,
        grid_spec=grid_spec,
        out_shape=(jax.ShapeDtypeStruct((T, OUT_W), jnp.float32),
                   jax.ShapeDtypeStruct((1, H), jnp.float32)),
        compiler_params=pltpu.CompilerParams(dimension_semantics=("arbitrary",)),
    )
    logp_pad, h_fin = fn(tokens.astype(jnp.int32), params["embedding"], h0,
                         params["w_gru"], bg, params["w_out"], params["b_out"])
    return logp_pad[:, :V], h_fin.reshape(1, 1, H)


def _reference_forward(tokens, hidden, p):
    """Pure-JAX reference: applies the PyTorch DecoderRNN.forward once per token."""
    H = HIDDEN
    hp = jax.lax.Precision.HIGHEST
    w_i, w_h = p["w_gru"][:H], p["w_gru"][H:]
    b_i, b_h = p["b_gru"][0:1], p["b_gru"][1:2]
    h = hidden.reshape(1, H)
    logps = []
    for t in range(tokens.shape[0]):
        x = jnp.maximum(p["embedding"][tokens[t]][None, :], 0.0)
        gi = jnp.dot(x, w_i, precision=hp) + b_i
        gh = jnp.dot(h, w_h, precision=hp) + b_h
        r = jax.nn.sigmoid(gi[:, :H] + gh[:, :H])
        z = jax.nn.sigmoid(gi[:, H:2 * H] + gh[:, H:2 * H])
        n = jnp.tanh(gi[:, 2 * H:] + r * gh[:, 2 * H:])
        h = (1.0 - z) * n + z * h
        logits = jnp.dot(h, p["w_out"], precision=hp) + p["b_out"]
        logps.append(jax.nn.log_softmax(logits, axis=-1))
    return jnp.concatenate(logps, axis=0), h.reshape(1, 1, H)


def make_params(key):
    H, V = HIDDEN, VOCAB
    ks = jax.random.split(key, 5)
    nrm = lambda k, shape, s=0.1: (s * jax.random.normal(k, shape)).astype(jnp.float32)
    return {
        "embedding": nrm(ks[0], (V, H), 1.0),
        # GRU weights pre-transposed to (in, out), gates packed (r|z|n) along out lanes.
        "w_gru": nrm(ks[1], (2 * H, 3 * H)),   # rows [0:H]=W_i^T, rows [H:2H]=W_h^T
        "b_gru": nrm(ks[2], (2, 3 * H)),       # row0 = b_i, row1 = b_h
        # out Linear(H -> V), pre-transposed
        "w_out": nrm(ks[3], (H, V)),
        "b_out": nrm(ks[4], (1, V)),
    }


if __name__ == "__main__":
    key = jax.random.PRNGKey(0)
    kp, kh, kt = jax.random.split(key, 3)

    params = make_params(kp)
    tokens = jax.random.randint(kt, (SEQ,), 0, VOCAB).astype(jnp.int32)          # (8,)
    hidden0 = (0.1 * jax.random.normal(kh, (1, 1, HIDDEN))).astype(jnp.float32)  # (1,1,32)

    # Multi-step fused decode (T = 8) in a single kernel launch.
    logp, h_fin = decoder_rnn_forward(tokens, hidden0, params)
    jax.block_until_ready((logp, h_fin))
    r_logp, r_h = _reference_forward(tokens, hidden0, params)
    assert jnp.allclose(logp, r_logp, rtol=1e-4, atol=1e-4), "multi-step logp mismatch"
    assert jnp.allclose(h_fin, r_h, rtol=1e-4, atol=1e-4), "multi-step hidden mismatch"

    # Single step (T = 1) == exactly DecoderRNN.forward(input, hidden).
    logp1, h1 = decoder_rnn_forward(tokens[:1], hidden0, params)
    r_logp1, r_h1 = _reference_forward(tokens[:1], hidden0, params)
    assert jnp.allclose(logp1, r_logp1, rtol=1e-4, atol=1e-4), "single-step logp mismatch"
    assert jnp.allclose(h1, r_h1, rtol=1e-4, atol=1e-4), "single-step hidden mismatch"

    print("KERNEL_OK")
</pallas_src>

<mosaic_0001>
module attributes {stable_mosaic.version = 11 : i64} {
  func.func @_decoder_kernel(%arg0: i32, %arg1: memref<8xi32, #tpu.memory_space<smem>>, %arg2: memref<64x32xf32, #tpu.memory_space<vmem>>, %arg3: memref<1x32xf32, #tpu.memory_space<vmem>>, %arg4: memref<64x96xf32, #tpu.memory_space<vmem>>, %arg5: memref<2x96xf32, #tpu.memory_space<vmem>>, %arg6: memref<32x64xf32, #tpu.memory_space<vmem>>, %arg7: memref<1x64xf32, #tpu.memory_space<vmem>>, %arg8: memref<8x128xf32, #tpu.memory_space<vmem>>, %arg9: memref<1x32xf32, #tpu.memory_space<vmem>>) attributes {dimension_semantics = [#tpu.dimension_semantics<arbitrary>], iteration_bounds = array<i64: 1>, scalar_prefetch = 1 : i64, scratch_operands = 0 : i64, tpu.core_type = #tpu.core_type<tc>, window_params = [{pipeline_mode = #tpu.pipeline_mode<synchronous>, transform_indices = @transform_0, window_bounds = array<i64: 64, 32>}, {pipeline_mode = #tpu.pipeline_mode<synchronous>, transform_indices = @transform_1, window_bounds = array<i64: 1, 32>}, {pipeline_mode = #tpu.pipeline_mode<synchronous>, transform_indices = @transform_2, window_bounds = array<i64: 64, 96>}, {pipeline_mode = #tpu.pipeline_mode<synchronous>, transform_indices = @transform_3, window_bounds = array<i64: 2, 96>}, {pipeline_mode = #tpu.pipeline_mode<synchronous>, transform_indices = @transform_4, window_bounds = array<i64: 32, 64>}, {pipeline_mode = #tpu.pipeline_mode<synchronous>, transform_indices = @transform_5, window_bounds = array<i64: 1, 64>}, {pipeline_mode = #tpu.pipeline_mode<synchronous>, transform_indices = @transform_6, window_bounds = array<i64: 8, 128>}, {pipeline_mode = #tpu.pipeline_mode<synchronous>, transform_indices = @transform_7, window_bounds = array<i64: 1, 32>}]} {
    %c0 = arith.constant 0 : index
    %0 = memref.load %arg1[%c0] : memref<8xi32, #tpu.memory_space<smem>>
    %1 = arith.index_cast %0 : i32 to index
    %c0_0 = arith.constant 0 : index
    %2 = vector.load %arg2[%1, %c0_0] : memref<64x32xf32, #tpu.memory_space<vmem>>, vector<1x32xf32>
    %c1 = arith.constant 1 : index
    %3 = memref.load %arg1[%c1] : memref<8xi32, #tpu.memory_space<smem>>
    %4 = arith.index_cast %3 : i32 to index
    %c0_1 = arith.constant 0 : index
    %5 = vector.load %arg2[%4, %c0_1] : memref<64x32xf32, #tpu.memory_space<vmem>>, vector<1x32xf32>
    %c2 = arith.constant 2 : index
    %6 = memref.load %arg1[%c2] : memref<8xi32, #tpu.memory_space<smem>>
    %7 = arith.index_cast %6 : i32 to index
    %c0_2 = arith.constant 0 : index
    %8 = vector.load %arg2[%7, %c0_2] : memref<64x32xf32, #tpu.memory_space<vmem>>, vector<1x32xf32>
    %c3 = arith.constant 3 : index
    %9 = memref.load %arg1[%c3] : memref<8xi32, #tpu.memory_space<smem>>
    %10 = arith.index_cast %9 : i32 to index
    %c0_3 = arith.constant 0 : index
    %11 = vector.load %arg2[%10, %c0_3] : memref<64x32xf32, #tpu.memory_space<vmem>>, vector<1x32xf32>
    %c4 = arith.constant 4 : index
    %12 = memref.load %arg1[%c4] : memref<8xi32, #tpu.memory_space<smem>>
    %13 = arith.index_cast %12 : i32 to index
    %c0_4 = arith.constant 0 : index
    %14 = vector.load %arg2[%13, %c0_4] : memref<64x32xf32, #tpu.memory_space<vmem>>, vector<1x32xf32>
    %c5 = arith.constant 5 : index
    %15 = memref.load %arg1[%c5] : memref<8xi32, #tpu.memory_space<smem>>
    %16 = arith.index_cast %15 : i32 to index
    %c0_5 = arith.constant 0 : index
    %17 = vector.load %arg2[%16, %c0_5] : memref<64x32xf32, #tpu.memory_space<vmem>>, vector<1x32xf32>
    %c6 = arith.constant 6 : index
    %18 = memref.load %arg1[%c6] : memref<8xi32, #tpu.memory_space<smem>>
    %19 = arith.index_cast %18 : i32 to index
    %c0_6 = arith.constant 0 : index
    %20 = vector.load %arg2[%19, %c0_6] : memref<64x32xf32, #tpu.memory_space<vmem>>, vector<1x32xf32>
    %c7 = arith.constant 7 : index
    %21 = memref.load %arg1[%c7] : memref<8xi32, #tpu.memory_space<smem>>
    %22 = arith.index_cast %21 : i32 to index
    %c0_7 = arith.constant 0 : index
    %23 = vector.load %arg2[%22, %c0_7] : memref<64x32xf32, #tpu.memory_space<vmem>>, vector<1x32xf32>
    %24 = tpu.concatenate %2, %5, %8, %11, %14, %17, %20, %23 in 0 : vector<1x32xf32>, vector<1x32xf32>, vector<1x32xf32>, vector<1x32xf32>, vector<1x32xf32>, vector<1x32xf32>, vector<1x32xf32>, vector<1x32xf32> -> vector<8x32xf32>
    %cst = arith.constant 0.000000e+00 : f32
    %25 = vector.broadcast %cst : f32 to vector<8x32xf32>
    %26 = arith.maximumf %24, %25 : vector<8x32xf32>
    %c0_8 = arith.constant 0 : index
    %c0_9 = arith.constant 0 : index
    %27 = vector.load %arg4[%c0_8, %c0_9] : memref<64x96xf32, #tpu.memory_space<vmem>>, vector<32x96xf32>
    %cst_10 = arith.constant dense<0.000000e+00> : vector<8x96xf32>
    %28 = tpu.matmul %26, %27, %cst_10 {dimension_numbers = #tpu.dot_dimension_numbers<[1], [0], [0], [1], [0, 0, 1, 1], [], []>} : vector<8x32xf32>, vector<32x96xf32>, vector<8x96xf32> -> vector<8x96xf32>
    %c0_11 = arith.constant 0 : index
    %c0_12 = arith.constant 0 : index
    %29 = vector.load %arg5[%c0_11, %c0_12] : memref<2x96xf32, #tpu.memory_space<vmem>>, vector<1x96xf32>
    %30 = vector.broadcast %29 : vector<1x96xf32> to vector<8x96xf32>
    %31 = arith.addf %28, %30 : vector<8x96xf32>
    %c32 = arith.constant 32 : index
    %c0_13 = arith.constant 0 : index
    %32 = vector.load %arg4[%c32, %c0_13] : memref<64x96xf32, #tpu.memory_space<vmem>>, vector<32x96xf32>
    %c1_14 = arith.constant 1 : index
    %c0_15 = arith.constant 0 : index
    %33 = vector.load %arg5[%c1_14, %c0_15] : memref<2x96xf32, #tpu.memory_space<vmem>>, vector<1x96xf32>
    %c0_16 = arith.constant 0 : index
    %c0_17 = arith.constant 0 : index
    %34 = vector.load %arg3[%c0_16, %c0_17] : memref<1x32xf32, #tpu.memory_space<vmem>>, vector<1x32xf32>
    %35 = vector.extract_strided_slice %31 {offsets = [0, 0], sizes = [1, 96], strides = [1, 1]} : vector<8x96xf32> to vector<1x96xf32>
    %cst_18 = arith.constant dense<0.000000e+00> : vector<1x96xf32>
    %36 = tpu.matmul %34, %32, %cst_18 {dimension_numbers = #tpu.dot_dimension_numbers<[1], [0], [0], [1], [0, 0, 1, 1], [], []>} : vector<1x32xf32>, vector<32x96xf32>, vector<1x96xf32> -> vector<1x96xf32>
    %37 = arith.addf %36, %33 : vector<1x96xf32>
    %38 = vector.extract_strided_slice %35 {offsets = [0, 0], sizes = [1, 32], strides = [1, 1]} : vector<1x96xf32> to vector<1x32xf32>
    %39 = vector.extract_strided_slice %37 {offsets = [0, 0], sizes = [1, 32], strides = [1, 1]} : vector<1x96xf32> to vector<1x32xf32>
    %40 = arith.addf %38, %39 : vector<1x32xf32>
    %41 = arith.negf %40 : vector<1x32xf32>
    %42 = math.exp %41 : vector<1x32xf32>
    %cst_19 = arith.constant 1.000000e+00 : f32
    %43 = vector.broadcast %cst_19 : f32 to vector<1x32xf32>
    %44 = arith.addf %43, %42 : vector<1x32xf32>
    %45 = arith.divf %43, %44 : vector<1x32xf32>
    %46 = vector.extract_strided_slice %35 {offsets = [0, 32], sizes = [1, 32], strides = [1, 1]} : vector<1x96xf32> to vector<1x32xf32>
    %47 = vector.extract_strided_slice %37 {offsets = [0, 32], sizes = [1, 32], strides = [1, 1]} : vector<1x96xf32> to vector<1x32xf32>
    %48 = arith.addf %46, %47 : vector<1x32xf32>
    %49 = arith.negf %48 : vector<1x32xf32>
    %50 = math.exp %49 : vector<1x32xf32>
    %cst_20 = arith.constant 1.000000e+00 : f32
    %51 = vector.broadcast %cst_20 : f32 to vector<1x32xf32>
    %52 = arith.addf %51, %50 : vector<1x32xf32>
    %53 = arith.divf %51, %52 : vector<1x32xf32>
    %54 = vector.extract_strided_slice %35 {offsets = [0, 64], sizes = [1, 32], strides = [1, 1]} : vector<1x96xf32> to vector<1x32xf32>
    %55 = vector.extract_strided_slice %37 {offsets = [0, 64], sizes = [1, 32], strides = [1, 1]} : vector<1x96xf32> to vector<1x32xf32>
    %56 = arith.mulf %45, %55 : vector<1x32xf32>
    %57 = arith.addf %54, %56 : vector<1x32xf32>
    %58 = math.tanh %57 : vector<1x32xf32>
    %cst_21 = arith.constant 1.000000e+00 : f32
    %59 = vector.broadcast %cst_21 : f32 to vector<1x32xf32>
    %60 = arith.subf %59, %53 : vector<1x32xf32>
    %61 = arith.mulf %60, %58 : vector<1x32xf32>
    %62 = arith.mulf %53, %34 : vector<1x32xf32>
    %63 = arith.addf %61, %62 : vector<1x32xf32>
    %64 = vector.extract_strided_slice %31 {offsets = [1, 0], sizes = [1, 96], strides = [1, 1]} : vector<8x96xf32> to vector<1x96xf32>
    %cst_22 = arith.constant dense<0.000000e+00> : vector<1x96xf32>
    %65 = tpu.matmul %63, %32, %cst_22 {dimension_numbers = #tpu.dot_dimension_numbers<[1], [0], [0], [1], [0, 0, 1, 1], [], []>} : vector<1x32xf32>, vector<32x96xf32>, vector<1x96xf32> -> vector<1x96xf32>
    %66 = arith.addf %65, %33 : vector<1x96xf32>
    %67 = vector.extract_strided_slice %64 {offsets = [0, 0], sizes = [1, 32], strides = [1, 1]} : vector<1x96xf32> to vector<1x32xf32>
    %68 = vector.extract_strided_slice %66 {offsets = [0, 0], sizes = [1, 32], strides = [1, 1]} : vector<1x96xf32> to vector<1x32xf32>
    %69 = arith.addf %67, %68 : vector<1x32xf32>
    %70 = arith.negf %69 : vector<1x32xf32>
    %71 = math.exp %70 : vector<1x32xf32>
    %cst_23 = arith.constant 1.000000e+00 : f32
    %72 = vector.broadcast %cst_23 : f32 to vector<1x32xf32>
    %73 = arith.addf %72, %71 : vector<1x32xf32>
    %74 = arith.divf %72, %73 : vector<1x32xf32>
    %75 = vector.extract_strided_slice %64 {offsets = [0, 32], sizes = [1, 32], strides = [1, 1]} : vector<1x96xf32> to vector<1x32xf32>
    %76 = vector.extract_strided_slice %66 {offsets = [0, 32], sizes = [1, 32], strides = [1, 1]} : vector<1x96xf32> to vector<1x32xf32>
    %77 = arith.addf %75, %76 : vector<1x32xf32>
    %78 = arith.negf %77 : vector<1x32xf32>
    %79 = math.exp %78 : vector<1x32xf32>
    %cst_24 = arith.constant 1.000000e+00 : f32
    %80 = vector.broadcast %cst_24 : f32 to vector<1x32xf32>
    %81 = arith.addf %80, %79 : vector<1x32xf32>
    %82 = arith.divf %80, %81 : vector<1x32xf32>
    %83 = vector.extract_strided_slice %64 {offsets = [0, 64], sizes = [1, 32], strides = [1, 1]} : vector<1x96xf32> to vector<1x32xf32>
    %84 = vector.extract_strided_slice %66 {offsets = [0, 64], sizes = [1, 32], strides = [1, 1]} : vector<1x96xf32> to vector<1x32xf32>
    %85 = arith.mulf %74, %84 : vector<1x32xf32>
    %86 = arith.addf %83, %85 : vector<1x32xf32>
    %87 = math.tanh %86 : vector<1x32xf32>
    %cst_25 = arith.constant 1.000000e+00 : f32
    %88 = vector.broadcast %cst_25 : f32 to vector<1x32xf32>
    %89 = arith.subf %88, %82 : vector<1x32xf32>
    %90 = arith.mulf %89, %87 : vector<1x32xf32>
    %91 = arith.mulf %82, %63 : vector<1x32xf32>
    %92 = arith.addf %90, %91 : vector<1x32xf32>
    %93 = vector.extract_strided_slice %31 {offsets = [2, 0], sizes = [1, 96], strides = [1, 1]} : vector<8x96xf32> to vector<1x96xf32>
    %cst_26 = arith.constant dense<0.000000e+00> : vector<1x96xf32>
    %94 = tpu.matmul %92, %32, %cst_26 {dimension_numbers = #tpu.dot_dimension_numbers<[1], [0], [0], [1], [0, 0, 1, 1], [], []>} : vector<1x32xf32>, vector<32x96xf32>, vector<1x96xf32> -> vector<1x96xf32>
    %95 = arith.addf %94, %33 : vector<1x96xf32>
    %96 = vector.extract_strided_slice %93 {offsets = [0, 0], sizes = [1, 32], strides = [1, 1]} : vector<1x96xf32> to vector<1x32xf32>
    %97 = vector.extract_strided_slice %95 {offsets = [0, 0], sizes = [1, 32], strides = [1, 1]} : vector<1x96xf32> to vector<1x32xf32>
    %98 = arith.addf %96, %97 : vector<1x32xf32>
    %99 = arith.negf %98 : vector<1x32xf32>
    %100 = math.exp %99 : vector<1x32xf32>
    %cst_27 = arith.constant 1.000000e+00 : f32
    %101 = vector.broadcast %cst_27 : f32 to vector<1x32xf32>
    %102 = arith.addf %101, %100 : vector<1x32xf32>
    %103 = arith.divf %101, %102 : vector<1x32xf32>
    %104 = vector.extract_strided_slice %93 {offsets = [0, 32], sizes = [1, 32], strides = [1, 1]} : vector<1x96xf32> to vector<1x32xf32>
    %105 = vector.extract_strided_slice %95 {offsets = [0, 32], sizes = [1, 32], strides = [1, 1]} : vector<1x96xf32> to vector<1x32xf32>
    %106 = arith.addf %104, %105 : vector<1x32xf32>
    %107 = arith.negf %106 : vector<1x32xf32>
    %108 = math.exp %107 : vector<1x32xf32>
    %cst_28 = arith.constant 1.000000e+00 : f32
    %109 = vector.broadcast %cst_28 : f32 to vector<1x32xf32>
    %110 = arith.addf %109, %108 : vector<1x32xf32>
    %111 = arith.divf %109, %110 : vector<1x32xf32>
    %112 = vector.extract_strided_slice %93 {offsets = [0, 64], sizes = [1, 32], strides = [1, 1]} : vector<1x96xf32> to vector<1x32xf32>
    %113 = vector.extract_strided_slice %95 {offsets = [0, 64], sizes = [1, 32], strides = [1, 1]} : vector<1x96xf32> to vector<1x32xf32>
    %114 = arith.mulf %103, %113 : vector<1x32xf32>
    %115 = arith.addf %112, %114 : vector<1x32xf32>
    %116 = math.tanh %115 : vector<1x32xf32>
    %cst_29 = arith.constant 1.000000e+00 : f32
    %117 = vector.broadcast %cst_29 : f32 to vector<1x32xf32>
    %118 = arith.subf %117, %111 : vector<1x32xf32>
    %119 = arith.mulf %118, %116 : vector<1x32xf32>
    %120 = arith.mulf %111, %92 : vector<1x32xf32>
    %121 = arith.addf %119, %120 : vector<1x32xf32>
    %122 = vector.extract_strided_slice %31 {offsets = [3, 0], sizes = [1, 96], strides = [1, 1]} : vector<8x96xf32> to vector<1x96xf32>
    %cst_30 = arith.constant dense<0.000000e+00> : vector<1x96xf32>
    %123 = tpu.matmul %121, %32, %cst_30 {dimension_numbers = #tpu.dot_dimension_numbers<[1], [0], [0], [1], [0, 0, 1, 1], [], []>} : vector<1x32xf32>, vector<32x96xf32>, vector<1x96xf32> -> vector<1x96xf32>
    %124 = arith.addf %123, %33 : vector<1x96xf32>
    %125 = vector.extract_strided_slice %122 {offsets = [0, 0], sizes = [1, 32], strides = [1, 1]} : vector<1x96xf32> to vector<1x32xf32>
    %126 = vector.extract_strided_slice %124 {offsets = [0, 0], sizes = [1, 32], strides = [1, 1]} : vector<1x96xf32> to vector<1x32xf32>
    %127 = arith.addf %125, %126 : vector<1x32xf32>
    %128 = arith.negf %127 : vector<1x32xf32>
    %129 = math.exp %128 : vector<1x32xf32>
    %cst_31 = arith.constant 1.000000e+00 : f32
    %130 = vector.broadcast %cst_31 : f32 to vector<1x32xf32>
    %131 = arith.addf %130, %129 : vector<1x32xf32>
    %132 = arith.divf %130, %131 : vector<1x32xf32>
    %133 = vector.extract_strided_slice %122 {offsets = [0, 32], sizes = [1, 32], strides = [1, 1]} : vector<1x96xf32> to vector<1x32xf32>
    %134 = vector.extract_strided_slice %124 {offsets = [0, 32], sizes = [1, 32], strides = [1, 1]} : vector<1x96xf32> to vector<1x32xf32>
    %135 = arith.addf %133, %134 : vector<1x32xf32>
    %136 = arith.negf %135 : vector<1x32xf32>
    %137 = math.exp %136 : vector<1x32xf32>
    %cst_32 = arith.constant 1.000000e+00 : f32
    %138 = vector.broadcast %cst_32 : f32 to vector<1x32xf32>
    %139 = arith.addf %138, %137 : vector<1x32xf32>
    %140 = arith.divf %138, %139 : vector<1x32xf32>
    %141 = vector.extract_strided_slice %122 {offsets = [0, 64], sizes = [1, 32], strides = [1, 1]} : vector<1x96xf32> to vector<1x32xf32>
    %142 = vector.extract_strided_slice %124 {offsets = [0, 64], sizes = [1, 32], strides = [1, 1]} : vector<1x96xf32> to vector<1x32xf32>
    %143 = arith.mulf %132, %142 : vector<1x32xf32>
    %144 = arith.addf %141, %143 : vector<1x32xf32>
    %145 = math.tanh %144 : vector<1x32xf32>
    %cst_33 = arith.constant 1.000000e+00 : f32
    %146 = vector.broadcast %cst_33 : f32 to vector<1x32xf32>
    %147 = arith.subf %146, %140 : vector<1x32xf32>
    %148 = arith.mulf %147, %145 : vector<1x32xf32>
    %149 = arith.mulf %140, %121 : vector<1x32xf32>
    %150 = arith.addf %148, %149 : vector<1x32xf32>
    %151 = vector.extract_strided_slice %31 {offsets = [4, 0], sizes = [1, 96], strides = [1, 1]} : vector<8x96xf32> to vector<1x96xf32>
    %cst_34 = arith.constant dense<0.000000e+00> : vector<1x96xf32>
    %152 = tpu.matmul %150, %32, %cst_34 {dimension_numbers = #tpu.dot_dimension_numbers<[1], [0], [0], [1], [0, 0, 1, 1], [], []>} : vector<1x32xf32>, vector<32x96xf32>, vector<1x96xf32> -> vector<1x96xf32>
    %153 = arith.addf %152, %33 : vector<1x96xf32>
    %154 = vector.extract_strided_slice %151 {offsets = [0, 0], sizes = [1, 32], strides = [1, 1]} : vector<1x96xf32> to vector<1x32xf32>
    %155 = vector.extract_strided_slice %153 {offsets = [0, 0], sizes = [1, 32], strides = [1, 1]} : vector<1x96xf32> to vector<1x32xf32>
    %156 = arith.addf %154, %155 : vector<1x32xf32>
    %157 = arith.negf %156 : vector<1x32xf32>
    %158 = math.exp %157 : vector<1x32xf32>
    %cst_35 = arith.constant 1.000000e+00 : f32
    %159 = vector.broadcast %cst_35 : f32 to vector<1x32xf32>
    %160 = arith.addf %159, %158 : vector<1x32xf32>
    %161 = arith.divf %159, %160 : vector<1x32xf32>
    %162 = vector.extract_strided_slice %151 {offsets = [0, 32], sizes = [1, 32], strides = [1, 1]} : vector<1x96xf32> to vector<1x32xf32>
    %163 = vector.extract_strided_slice %153 {offsets = [0, 32], sizes = [1, 32], strides = [1, 1]} : vector<1x96xf32> to vector<1x32xf32>
    %164 = arith.addf %162, %163 : vector<1x32xf32>
    %165 = arith.negf %164 : vector<1x32xf32>
    %166 = math.exp %165 : vector<1x32xf32>
    %cst_36 = arith.constant 1.000000e+00 : f32
    %167 = vector.broadcast %cst_36 : f32 to vector<1x32xf32>
    %168 = arith.addf %167, %166 : vector<1x32xf32>
    %169 = arith.divf %167, %168 : vector<1x32xf32>
    %170 = vector.extract_strided_slice %151 {offsets = [0, 64], sizes = [1, 32], strides = [1, 1]} : vector<1x96xf32> to vector<1x32xf32>
    %171 = vector.extract_strided_slice %153 {offsets = [0, 64], sizes = [1, 32], strides = [1, 1]} : vector<1x96xf32> to vector<1x32xf32>
    %172 = arith.mulf %161, %171 : vector<1x32xf32>
    %173 = arith.addf %170, %172 : vector<1x32xf32>
    %174 = math.tanh %173 : vector<1x32xf32>
    %cst_37 = arith.constant 1.000000e+00 : f32
    %175 = vector.broadcast %cst_37 : f32 to vector<1x32xf32>
    %176 = arith.subf %175, %169 : vector<1x32xf32>
    %177 = arith.mulf %176, %174 : vector<1x32xf32>
    %178 = arith.mulf %169, %150 : vector<1x32xf32>
    %179 = arith.addf %177, %178 : vector<1x32xf32>
    %180 = vector.extract_strided_slice %31 {offsets = [5, 0], sizes = [1, 96], strides = [1, 1]} : vector<8x96xf32> to vector<1x96xf32>
    %cst_38 = arith.constant dense<0.000000e+00> : vector<1x96xf32>
    %181 = tpu.matmul %179, %32, %cst_38 {dimension_numbers = #tpu.dot_dimension_numbers<[1], [0], [0], [1], [0, 0, 1, 1], [], []>} : vector<1x32xf32>, vector<32x96xf32>, vector<1x96xf32> -> vector<1x96xf32>
    %182 = arith.addf %181, %33 : vector<1x96xf32>
    %183 = vector.extract_strided_slice %180 {offsets = [0, 0], sizes = [1, 32], strides = [1, 1]} : vector<1x96xf32> to vector<1x32xf32>
    %184 = vector.extract_strided_slice %182 {offsets = [0, 0], sizes = [1, 32], strides = [1, 1]} : vector<1x96xf32> to vector<1x32xf32>
    %185 = arith.addf %183, %184 : vector<1x32xf32>
    %186 = arith.negf %185 : vector<1x32xf32>
    %187 = math.exp %186 : vector<1x32xf32>
    %cst_39 = arith.constant 1.000000e+00 : f32
    %188 = vector.broadcast %cst_39 : f32 to vector<1x32xf32>
    %189 = arith.addf %188, %187 : vector<1x32xf32>
    %190 = arith.divf %188, %189 : vector<1x32xf32>
    %191 = vector.extract_strided_slice %180 {offsets = [0, 32], sizes = [1, 32], strides = [1, 1]} : vector<1x96xf32> to vector<1x32xf32>
    %192 = vector.extract_strided_slice %182 {offsets = [0, 32], sizes = [1, 32], strides = [1, 1]} : vector<1x96xf32> to vector<1x32xf32>
    %193 = arith.addf %191, %192 : vector<1x32xf32>
    %194 = arith.negf %193 : vector<1x32xf32>
    %195 = math.exp %194 : vector<1x32xf32>
    %cst_40 = arith.constant 1.000000e+00 : f32
    %196 = vector.broadcast %cst_40 : f32 to vector<1x32xf32>
    %197 = arith.addf %196, %195 : vector<1x32xf32>
    %198 = arith.divf %196, %197 : vector<1x32xf32>
    %199 = vector.extract_strided_slice %180 {offsets = [0, 64], sizes = [1, 32], strides = [1, 1]} : vector<1x96xf32> to vector<1x32xf32>
    %200 = vector.extract_strided_slice %182 {offsets = [0, 64], sizes = [1, 32], strides = [1, 1]} : vector<1x96xf32> to vector<1x32xf32>
    %201 = arith.mulf %190, %200 : vector<1x32xf32>
    %202 = arith.addf %199, %201 : vector<1x32xf32>
    %203 = math.tanh %202 : vector<1x32xf32>
    %cst_41 = arith.constant 1.000000e+00 : f32
    %204 = vector.broadcast %cst_41 : f32 to vector<1x32xf32>
    %205 = arith.subf %204, %198 : vector<1x32xf32>
    %206 = arith.mulf %205, %203 : vector<1x32xf32>
    %207 = arith.mulf %198, %179 : vector<1x32xf32>
    %208 = arith.addf %206, %207 : vector<1x32xf32>
    %209 = vector.extract_strided_slice %31 {offsets = [6, 0], sizes = [1, 96], strides = [1, 1]} : vector<8x96xf32> to vector<1x96xf32>
    %cst_42 = arith.constant dense<0.000000e+00> : vector<1x96xf32>
    %210 = tpu.matmul %208, %32, %cst_42 {dimension_numbers = #tpu.dot_dimension_numbers<[1], [0], [0], [1], [0, 0, 1, 1], [], []>} : vector<1x32xf32>, vector<32x96xf32>, vector<1x96xf32> -> vector<1x96xf32>
    %211 = arith.addf %210, %33 : vector<1x96xf32>
    %212 = vector.extract_strided_slice %209 {offsets = [0, 0], sizes = [1, 32], strides = [1, 1]} : vector<1x96xf32> to vector<1x32xf32>
    %213 = vector.extract_strided_slice %211 {offsets = [0, 0], sizes = [1, 32], strides = [1, 1]} : vector<1x96xf32> to vector<1x32xf32>
    %214 = arith.addf %212, %213 : vector<1x32xf32>
    %215 = arith.negf %214 : vector<1x32xf32>
    %216 = math.exp %215 : vector<1x32xf32>
    %cst_43 = arith.constant 1.000000e+00 : f32
    %217 = vector.broadcast %cst_43 : f32 to vector<1x32xf32>
    %218 = arith.addf %217, %216 : vector<1x32xf32>
    %219 = arith.divf %217, %218 : vector<1x32xf32>
    %220 = vector.extract_strided_slice %209 {offsets = [0, 32], sizes = [1, 32], strides = [1, 1]} : vector<1x96xf32> to vector<1x32xf32>
    %221 = vector.extract_strided_slice %211 {offsets = [0, 32], sizes = [1, 32], strides = [1, 1]} : vector<1x96xf32> to vector<1x32xf32>
    %222 = arith.addf %220, %221 : vector<1x32xf32>
    %223 = arith.negf %222 : vector<1x32xf32>
    %224 = math.exp %223 : vector<1x32xf32>
    %cst_44 = arith.constant 1.000000e+00 : f32
    %225 = vector.broadcast %cst_44 : f32 to vector<1x32xf32>
    %226 = arith.addf %225, %224 : vector<1x32xf32>
    %227 = arith.divf %225, %226 : vector<1x32xf32>
    %228 = vector.extract_strided_slice %209 {offsets = [0, 64], sizes = [1, 32], strides = [1, 1]} : vector<1x96xf32> to vector<1x32xf32>
    %229 = vector.extract_strided_slice %211 {offsets = [0, 64], sizes = [1, 32], strides = [1, 1]} : vector<1x96xf32> to vector<1x32xf32>
    %230 = arith.mulf %219, %229 : vector<1x32xf32>
    %231 = arith.addf %228, %230 : vector<1x32xf32>
    %232 = math.tanh %231 : vector<1x32xf32>
    %cst_45 = arith.constant 1.000000e+00 : f32
    %233 = vector.broadcast %cst_45 : f32 to vector<1x32xf32>
    %234 = arith.subf %233, %227 : vector<1x32xf32>
    %235 = arith.mulf %234, %232 : vector<1x32xf32>
    %236 = arith.mulf %227, %208 : vector<1x32xf32>
    %237 = arith.addf %235, %236 : vector<1x32xf32>
    %238 = vector.extract_strided_slice %31 {offsets = [7, 0], sizes = [1, 96], strides = [1, 1]} : vector<8x96xf32> to vector<1x96xf32>
    %cst_46 = arith.constant dense<0.000000e+00> : vector<1x96xf32>
    %239 = tpu.matmul %237, %32, %cst_46 {dimension_numbers = #tpu.dot_dimension_numbers<[1], [0], [0], [1], [0, 0, 1, 1], [], []>} : vector<1x32xf32>, vector<32x96xf32>, vector<1x96xf32> -> vector<1x96xf32>
    %240 = arith.addf %239, %33 : vector<1x96xf32>
    %241 = vector.extract_strided_slice %238 {offsets = [0, 0], sizes = [1, 32], strides = [1, 1]} : vector<1x96xf32> to vector<1x32xf32>
    %242 = vector.extract_strided_slice %240 {offsets = [0, 0], sizes = [1, 32], strides = [1, 1]} : vector<1x96xf32> to vector<1x32xf32>
    %243 = arith.addf %241, %242 : vector<1x32xf32>
    %244 = arith.negf %243 : vector<1x32xf32>
    %245 = math.exp %244 : vector<1x32xf32>
    %cst_47 = arith.constant 1.000000e+00 : f32
    %246 = vector.broadcast %cst_47 : f32 to vector<1x32xf32>
    %247 = arith.addf %246, %245 : vector<1x32xf32>
    %248 = arith.divf %246, %247 : vector<1x32xf32>
    %249 = vector.extract_strided_slice %238 {offsets = [0, 32], sizes = [1, 32], strides = [1, 1]} : vector<1x96xf32> to vector<1x32xf32>
    %250 = vector.extract_strided_slice %240 {offsets = [0, 32], sizes = [1, 32], strides = [1, 1]} : vector<1x96xf32> to vector<1x32xf32>
    %251 = arith.addf %249, %250 : vector<1x32xf32>
    %252 = arith.negf %251 : vector<1x32xf32>
    %253 = math.exp %252 : vector<1x32xf32>
    %cst_48 = arith.constant 1.000000e+00 : f32
    %254 = vector.broadcast %cst_48 : f32 to vector<1x32xf32>
    %255 = arith.addf %254, %253 : vector<1x32xf32>
    %256 = arith.divf %254, %255 : vector<1x32xf32>
    %257 = vector.extract_strided_slice %238 {offsets = [0, 64], sizes = [1, 32], strides = [1, 1]} : vector<1x96xf32> to vector<1x32xf32>
    %258 = vector.extract_strided_slice %240 {offsets = [0, 64], sizes = [1, 32], strides = [1, 1]} : vector<1x96xf32> to vector<1x32xf32>
    %259 = arith.mulf %248, %258 : vector<1x32xf32>
    %260 = arith.addf %257, %259 : vector<1x32xf32>
    %261 = math.tanh %260 : vector<1x32xf32>
    %cst_49 = arith.constant 1.000000e+00 : f32
    %262 = vector.broadcast %cst_49 : f32 to vector<1x32xf32>
    %263 = arith.subf %262, %256 : vector<1x32xf32>
    %264 = arith.mulf %263, %261 : vector<1x32xf32>
    %265 = arith.mulf %256, %237 : vector<1x32xf32>
    %266 = arith.addf %264, %265 : vector<1x32xf32>
    %267 = tpu.concatenate %63, %92, %121, %150, %179, %208, %237, %266 in 0 : vector<1x32xf32>, vector<1x32xf32>, vector<1x32xf32>, vector<1x32xf32>, vector<1x32xf32>, vector<1x32xf32>, vector<1x32xf32>, vector<1x32xf32> -> vector<8x32xf32>
    %c0_50 = arith.constant 0 : index
    %c0_51 = arith.constant 0 : index
    %268 = vector.load %arg6[%c0_50, %c0_51] : memref<32x64xf32, #tpu.memory_space<vmem>>, vector<32x64xf32>
    %cst_52 = arith.constant dense<0.000000e+00> : vector<8x64xf32>
    %269 = tpu.matmul %267, %268, %cst_52 {dimension_numbers = #tpu.dot_dimension_numbers<[1], [0], [0], [1], [0, 0, 1, 1], [], []>} : vector<8x32xf32>, vector<32x64xf32>, vector<8x64xf32> -> vector<8x64xf32>
    %c0_53 = arith.constant 0 : index
    %c0_54 = arith.constant 0 : index
    %270 = vector.load %arg7[%c0_53, %c0_54] : memref<1x64xf32, #tpu.memory_space<vmem>>, vector<1x64xf32>
    %271 = vector.broadcast %270 : vector<1x64xf32> to vector<8x64xf32>
    %272 = arith.addf %269, %271 : vector<8x64xf32>
    %cst_55 = arith.constant dense<0xFF800000> : vector<8xf32>
    %273 = vector.multi_reduction <maximumf>, %272, %cst_55 [1] : vector<8x64xf32> to vector<8xf32>
    %274 = vector.shape_cast %273 : vector<8xf32> to vector<8x1xf32>
    %275 = vector.broadcast %274 : vector<8x1xf32> to vector<8x64xf32>
    %276 = arith.subf %272, %275 : vector<8x64xf32>
    %277 = vector.broadcast %274 : vector<8x1xf32> to vector<8x64xf32>
    %278 = arith.subf %272, %277 : vector<8x64xf32>
    %279 = math.exp %278 : vector<8x64xf32>
    %cst_56 = arith.constant dense<0.000000e+00> : vector<8xf32>
    %280 = vector.multi_reduction <add>, %279, %cst_56 [1] : vector<8x64xf32> to vector<8xf32>
    %281 = vector.shape_cast %280 : vector<8xf32> to vector<8x1xf32>
    %282 = math.log %281 : vector<8x1xf32>
    %283 = vector.broadcast %282 : vector<8x1xf32> to vector<8x64xf32>
    %284 = arith.subf %276, %283 : vector<8x64xf32>
    %cst_57 = arith.constant 0.000000e+00 : f32
    %285 = vector.broadcast %cst_57 : f32 to vector<8x64xf32>
    %286 = tpu.concatenate %284, %285 in 1 : vector<8x64xf32>, vector<8x64xf32> -> vector<8x128xf32>
    %c0_58 = arith.constant 0 : index
    %c0_59 = arith.constant 0 : index
    %287 = vector.load %arg8[%c0_58, %c0_59] : memref<8x128xf32, #tpu.memory_space<vmem>>, vector<8x128xf32>
    tpu.vector_store %arg8[%c0_58, %c0_59], %286 {strides = array<i32>} : memref<8x128xf32, #tpu.memory_space<vmem>>, vector<8x128xf32>,
    %c0_60 = arith.constant 0 : index
    %c0_61 = arith.constant 0 : index
    %288 = vector.load %arg9[%c0_60, %c0_61] : memref<1x32xf32, #tpu.memory_space<vmem>>, vector<1x32xf32>
    tpu.vector_store %arg9[%c0_60, %c0_61], %266 {strides = array<i32>} : memref<1x32xf32, #tpu.memory_space<vmem>>, vector<1x32xf32>,
    return
  }
  func.func @transform_0(%arg0: i32, %arg1: memref<8xi32, #tpu.memory_space<smem>>) -> (i32, i32) {
    %c0_i32 = arith.constant 0 : i32
    %c0_i32_0 = arith.constant 0 : i32
    %c0_i32_1 = arith.constant 0 : i32
    return %c0_i32, %c0_i32_0 : i32, i32
  }
  func.func @transform_1(%arg0: i32, %arg1: memref<8xi32, #tpu.memory_space<smem>>) -> (i32, i32) {
    %c0_i32 = arith.constant 0 : i32
    %c0_i32_0 = arith.constant 0 : i32
    %c0_i32_1 = arith.constant 0 : i32
    return %c0_i32, %c0_i32_0 : i32, i32
  }
  func.func @transform_2(%arg0: i32, %arg1: memref<8xi32, #tpu.memory_space<smem>>) -> (i32, i32) {
    %c0_i32 = arith.constant 0 : i32
    %c0_i32_0 = arith.constant 0 : i32
    %c0_i32_1 = arith.constant 0 : i32
    return %c0_i32, %c0_i32_0 : i32, i32
  }
  func.func @transform_3(%arg0: i32, %arg1: memref<8xi32, #tpu.memory_space<smem>>) -> (i32, i32) {
    %c0_i32 = arith.constant 0 : i32
    %c0_i32_0 = arith.constant 0 : i32
    %c0_i32_1 = arith.constant 0 : i32
    return %c0_i32, %c0_i32_0 : i32, i32
  }
  func.func @transform_4(%arg0: i32, %arg1: memref<8xi32, #tpu.memory_space<smem>>) -> (i32, i32) {
    %c0_i32 = arith.constant 0 : i32
    %c0_i32_0 = arith.constant 0 : i32
    %c0_i32_1 = arith.constant 0 : i32
    return %c0_i32, %c0_i32_0 : i32, i32
  }
  func.func @transform_5(%arg0: i32, %arg1: memref<8xi32, #tpu.memory_space<smem>>) -> (i32, i32) {
    %c0_i32 = arith.constant 0 : i32
    %c0_i32_0 = arith.constant 0 : i32
    %c0_i32_1 = arith.constant 0 : i32
    return %c0_i32, %c0_i32_0 : i32, i32
  }
  func.func @transform_6(%arg0: i32, %arg1: memref<8xi32, #tpu.memory_space<smem>>) -> (i32, i32) {
    %c0_i32 = arith.constant 0 : i32
    %c0_i32_0 = arith.constant 0 : i32
    %c0_i32_1 = arith.constant 0 : i32
    return %c0_i32, %c0_i32_0 : i32, i32
  }
  func.func @transform_7(%arg0: i32, %arg1: memref<8xi32, #tpu.memory_space<smem>>) -> (i32, i32) {
    %c0_i32 = arith.constant 0 : i32
    %c0_i32_0 = arith.constant 0 : i32
    %c0_i32_1 = arith.constant 0 : i32
    return %c0_i32, %c0_i32_0 : i32, i32
  }
}

</mosaic_0001>

<bundles_post_ra>
// kernel: tpu_custom_call.1
= control target key start
LH: loop header
LB: loop body
LE: loop exit
PB: predicated region body
PF: predicated region fallthrough
CT: control target
= control target key end

     0   :  { %s1869_s0 = inlined_call_operand.vmem [shape: s32[8], index: 0, kind: input, shape index: {}]   ;;  %s1870_s1 = inlined_call_operand.vmem [shape: f32[64,32], index: 1, kind: input, shape index: {}]   ;;  %s1871_s2 = inlined_call_operand.vmem [shape: f32[1,32], index: 2, kind: input, shape index: {}]   ;;  %s1872_s3 = inlined_call_operand.vmem [shape: f32[64,96], index: 3, kind: input, shape index: {}]   ;;  %s1873_s4 = inlined_call_operand.vmem [shape: f32[2,96], index: 4, kind: input, shape index: {}]   ;;  %s1874_s5 = inlined_call_operand.vmem [shape: f32[32,64], index: 5, kind: input, shape index: {}]   ;;  %s1875_s6 = inlined_call_operand.vmem [shape: f32[1,64], index: 6, kind: input, shape index: {}]   ;;  %s1876_s7 = inlined_call_operand.hbm [shape: f32[8,128], index: 7, kind: output, shape index: {0}]   ;;  %s1877_s8 = inlined_call_operand.hbm [shape: f32[1,32], index: 8, kind: output, shape index: {1}]  }
   0x1   :  { %s14_s29 = sshll.u32 %s1869_s0, 4  ;;  %s15_s29 = int_to_ptr.vmem [resolvable:$true] %s14_s29 }
   0x2   :  { %s1488_s30 = scalar_lea.vmem %s15_s29, 16  ;;  %p1493_p1 = scmp.lt.s32.totalorder %s15_s29, %s15_s29 }
   0x3   :  { %p1489_p0 = scmp.ne.s32.totalorder %s15_s29, %s1488_s30  ;;  %p1494_p2 = scmp.lt.s32.totalorder %s1488_s30, %s1488_s30 }
   0x5   :  { %p1495_p3 = por %p1494_p2, %p1493_p1 }
   0x7   :  { %p1496_p4 = pnand %p1495_p3, %p1489_p0 }
   0x9   :  { %1499 = shalt.err (!%p1496_p4)  }
   0xa   :  { %s1550_s9 = smov [#allocation3]  }
   0xb   :  { %17 = dma.vmem_to_smem %s15_s29, 16, %s1550_s9, [#allocation2] }
   0xc   :  { %1544 = dma.done.wait [#allocation2], 16 }
   0xd   :  { %1545 = vsyncadd [#allocation2], 4294967280 }
   0xe   :  { %19 = sfence }
   0xf   :  { %20 = vsyncpa [#allocation5], 0  ;;  %v177_v0 = vld [vmem:[%s1872_s3 + $0x20] sm:$0xff]  ;;  %v178_v1 = vld [vmem:[%s1872_s3 + $0x28] sm:$0xff]  ;;  %v1551_v3 = vmov 0.0|0.0   ;;  %vm1552_vm0 = vmmov 0  }
  0x10   :  { %v179_v2 = vld [vmem:[%s1872_s3 + $0x30] sm:$0xff]  ;;  %1373 = vmatprep.subr.bf16.mxu1 %v1551_v3  ;;  %v1617_v4 = vpack.c.bf16 %v178_v1, %v177_v0  ;;  %v180_v5 = vld [vmem:[%s1872_s3 + $0x38] sm:$0xff]  ;;  %v1553_v6 = vmov 0.0   ;;  %v94_v7 = vld [vmem:[%s1872_s3] sm:$0xff]  ;;  %1367 = vmatprep.subr.bf16.mxu0 %v1551_v3  ;;  %s34_s25 = sld [smem:[#allocation3]]  ;;  %s1180_s26 = sld [smem:[#allocation3 + $0x1]] }
  0x11   :  { %1276 = vmatprep.mubr.msk.f32.mxu1 %vm1552_vm0, %v1553_v6  ;;  %v95_v8 = vld [vmem:[%s1872_s3 + $0x8] sm:$0xff]  ;;  %v96_v9 = vld [vmem:[%s1872_s3 + $0x10] sm:$0xff]  ;;  %v97_v10 = vld [vmem:[%s1872_s3 + $0x18] sm:$0xff]  ;;  %1265 = vmatprep.mubr.msk.f32.mxu0 %vm1552_vm0, %v1553_v6  ;;  %v1640_v11 = vpack.c.bf16 %v180_v5, %v179_v2  ;;  %s1181_s27 = sld [smem:[#allocation3 + $0x2]]  ;;  %s1182_s28 = sld [smem:[#allocation3 + $0x3]] }
  0x12   :  { %1375 = vmatpush3.bf16.msra.mxu1 %v1617_v4  ;;  %v1368_v12 = vpack.c.bf16 %v95_v8, %v94_v7  ;;  %s1183_s29 = sld [smem:[#allocation3 + $0x4]]  ;;  %v1371_v13 = vpack.c.bf16 %v97_v10, %v96_v9  ;;  %s1643_s30 = sld [smem:[#allocation3 + $0x5]] }
  0x13   :  { %1376 = vmatprep.subr.bf16.mxu1 %v1551_v3  ;;  %s1645_s3 = sld [smem:[#allocation3 + $0x6]]  ;;  %s1648_s9 = sld [smem:[#allocation3 + $0x7]] }
  0x14   :  { %1369 = vmatpush3.bf16.msra.mxu0 %v1368_v12 }
  0x15   :  { %1370 = vmatprep.subr.bf16.mxu0 %v1551_v3 }
  0x16   :  { %21 = vsyncpa [#allocation7], 0  ;;  %1378 = vmatpush3.bf16.msra.mxu1 %v1640_v11  ;;  %vm103_vm1 = vcmask 261120   ;;  %v1654_v14 = vld [vmem:[%s1871_s2] sm:$0x1]  ;;  %s35_s13 = scalar_lea.vmem %s1870_s1, %s34_s25  ;;  %s38_s16 = scalar_lea.vmem %s1870_s1, %s1180_s26  ;;  %vm79_vm2 = vcmask 1040384   ;;  %v280_v55 = vlaneseq }
  0x17   :  { %1385 = vmatprep.subr.bf16.mxu1 %v1551_v3  ;;  %s41_s19 = scalar_lea.vmem %s1870_s1, %s1181_s27  ;;  %vm81_vm3 = vcmask 1041408   ;;  %vm83_vm4 = vcmask 1042432   ;;  %v36_v15 = vld [vmem:[%s35_s13] sm:$0x1]  ;;  %s44_s21 = scalar_lea.vmem %s1870_s1, %s1182_s28  ;;  %vm85_vm5 = vcmask 1043456   ;;  %vm87_vm6 = vcmask 1044480  }
  0x18   :  { %1372 = vmatpush3.bf16.msra.mxu0 %v1371_v13  ;;  %v39_v16 = vld [vmem:[%s38_s16] sm:$0x1]  ;;  %s47_s24 = scalar_lea.vmem %s1870_s1, %s1183_s29  ;;  %s50_s27 = scalar_lea.vmem %s1870_s1, %s1643_s30  ;;  %vm89_vm7 = vcmask 1045504   ;;  %vm91_vm8 = vcmask 1046528   ;;  %v1710_v38 = vld [vmem:[%s1873_s4 + $0x1] sm:$0x1] }
  0x19   :  { %1277 = vmatmul.mubr.msk.f32.vlgmr.msra.gmra.mrb[0].mxu1 %vm103_vm1, %v1654_v14  ;;  %v42_v17 = vld [vmem:[%s41_s19] sm:$0x1]  ;;  %1379 = vmatprep.subr.bf16.mxu0 %v1551_v3  ;;  %s53_s12 = scalar_lea.vmem %s1870_s1, %s1645_s3  ;;  %v59_v20 = vrot.slane %v39_v16, 7  ;;  %s56_s0 = scalar_lea.vmem %s1870_s1, %s1648_s9  ;;  %v281_v56 = vshrl.u32 %v280_v55, 7  ;;  %vm1123_vm9 = vcmask 523264   ;;  %vm1142_vm10 = vcmask 261127  }
  0x1a   :  { %v45_v18 = vld [vmem:[%s44_s21] sm:$0x1]  ;;  %v62_v21 = vrot.slane %v42_v17, 6  ;;  %1387 = vmatpush3.bf16.msra.mxu1 %v1617_v4  ;;  %1298 = vmatprep.mubr.msk.f32.mxu1 %vm1552_vm0, %v1553_v6  ;;  %s1554_s3 = smov 64   ;;  %s1556_s14 = smov 32  }
  0x1b   :  { %v48_v19 = vld [vmem:[%s47_s24] sm:$0x1]  ;;  %v65_v24 = vrot.slane %v45_v18, 5  ;;  %1388 = vmatprep.subr.bf16.mxu1 %v1551_v3  ;;  %v80_v28 = vsel %vm79_vm2, %v36_v15, %v59_v20  ;;  %v282_v57 = vsub.s32 0, %v281_v56  ;;  %s1557_s23 = smov [#allocation6]  }
  0x1c   :  { %v51_v22 = vld [vmem:[%s50_s27] sm:$0x1]  ;;  %v68_v25 = vrot.slane %v48_v19, 4  ;;  %v82_v30 = vsel %vm81_vm3, %v80_v28, %v62_v21 }
  0x1d   :  { %v54_v23 = vld [vmem:[%s53_s12] sm:$0x1]  ;;  %v71_v27 = vrot.slane %v51_v22, 3  ;;  %v84_v32 = vsel %vm83_vm4, %v82_v30, %v65_v24  ;;  %v283_v59 = vrot.slane %v1654_v14, %v282_v57 }
  0x1e   :  { %v57_v26 = vld [vmem:[%s56_s0] sm:$0x1]  ;;  %v74_v29 = vrot.slane %v54_v23, 2  ;;  %1390 = vmatpush3.bf16.msra.mxu1 %v1640_v11  ;;  %v86_v33 = vsel %vm85_vm5, %v84_v32, %v68_v25 }
  0x1f   :  { %v77_v31 = vrot.slane %v57_v26, 1  ;;  %1397 = vmatprep.subr.bf16.mxu1 %v1551_v3  ;;  %v88_v34 = vsel %vm87_vm6, %v86_v33, %v71_v27  ;;  %v1187_v44 = vld [vmem:[%s1873_s4] ss:$0 sm:$0xff]  ;;  %s1555_s4 = smov 96  }
  0x20   :  { %v90_v35 = vsel %vm89_vm7, %v88_v34, %v74_v29 }
  0x21   :  { %v92_v36 = vsel %vm91_vm8, %v90_v35, %v77_v31 }
  0x22   :  { %v93_v37 = vmax.f32 %v92_v36, 0.0 }
  0x24   :  { %1266 = vmatmul.mubr.msk.f32.vlgmr.msra.gmra.mrb[0].mxu0 %vm103_vm1, %v93_v37 }
  0x25   :  { %1381 = vmatpush3.bf16.msra.mxu0 %v1617_v4  ;;  %1287 = vmatprep.mubr.msk.f32.mxu0 %vm1552_vm0, %v1553_v6 }
  0x26   :  { %1382 = vmatprep.subr.bf16.mxu0 %v1551_v3 }
  0x29   :  { %1384 = vmatpush3.bf16.msra.mxu0 %v1640_v11 }
  0x2a   :  { %1391 = vmatprep.subr.bf16.mxu0 %v1551_v3 }
  0xec   :  { %v252_v39 = vpop.f32.mrb[0].mxu1 }
  0xed   :  { %v253_v40 = vadd.f32 %v252_v39, %v1710_v38  ;;  %v1278_v41 = vpop.f32.mrb[1].mxu1 }
  0xef   :  { %264 = vrot.lane.b32.xlu0 %v253_v40, %s1554_s3 }
  0xf7   :  { %v173_v42 = vpop.f32.mrb[0].mxu0 }
  0xf8   :  { %v1267_v43 = vpop.f32.mrb[1].mxu0  ;;  %v1717_v45 = vadd.f32 %v1187_v44, %v173_v42 }
  0xfa   :  { %v256_v46 = vadd.f32 %v253_v40, %v1717_v45 }
  0xfc   :  { %v1190_v47 = vmul.f32 -1.442695, %v256_v46 }
  0xfe   :  { %1436 = vpow2.f32 %v1190_v47 }
 0x108   :  { %v1437_v48 = vpop.eup %1436 }
 0x109   :  { %v260_v49 = vadd.f32 1.0, %v1437_v48 }
 0x10b   :  { %1438 = vrcp.f32 %v260_v49 }
 0x115   :  { %v1439_v50 = vpop.eup %1438 }
 0x116   :  { %v274_v61 = vsub.f32 1.0, %v1439_v50 }
 0x161   :  { %v265_v51 = vpop.permute.xlu0 %264 }
 0x162   :  { %v267_v52 = vmul.f32 %v1439_v50, %v265_v51 }
 0x164   :  { %269 = vrot.lane.b32.xlu0 %v267_v52, %s1554_s3 }
 0x1d6   :  { %v270_v53 = vpop.permute.xlu0 %269 }
 0x1d7   :  { %v272_v54 = vadd.f32 %v270_v53, %v1717_v45 }
 0x1d9   :  { %1440 = vtanh.f32 %v272_v54 }
 0x1e3   :  { %v1441_v58 = vpop.eup %1440 }
 0x1e4   :  { %276 = vrot.lane.b32.xlu1 %v1441_v58, %s1555_s4 }
 0x1e8   :  { %284 = vrot.lane.b32.xlu1 %v283_v59, %s1556_s14 }
 0x256   :  { %v277_v60 = vpop.permute.xlu1 %276 }
 0x257   :  { %v279_v63 = vmul.f32 %v277_v60, %v274_v61 }
 0x25a   :  { %v285_v62 = vpop.permute.xlu1 %284 }
 0x25b   :  { %v287_v0 = vmul.f32 %v1439_v50, %v285_v62 }
 0x25d   :  { %v1724_v1 = vadd.f32 %v287_v0, %v279_v63 }
 0x25f   :  { %290 = vrot.lane.b32.xlu0 %v1724_v1, %s1555_s4  ;;  %v390_v22 = vrot.slane %v1724_v1, 7 }
 0x2d1   :  { %v291_v2 = vpop.permute.xlu0 %290 }
 0x2d2   :  { %1288 = vmatmul.mubr.msk.f32.vlgmr.msra.gmra.mrb[2].mxu0 %vm103_vm1, %v291_v2 }
 0x2d3   :  { %1393 = vmatpush3.bf16.msra.mxu0 %v1617_v4  ;;  %1309 = vmatprep.mubr.msk.f32.mxu0 %vm1552_vm0, %v1553_v6 }
 0x2d4   :  { %1394 = vmatprep.subr.bf16.mxu0 %v1551_v3 }
 0x2d7   :  { %1396 = vmatpush3.bf16.msra.mxu0 %v1640_v11 }
 0x2d8   :  { %1403 = vmatprep.subr.bf16.mxu0 %v1551_v3 }
 0x3a5   :  { %v360_v5 = vpop.f32.mrb[2].mxu0 }
 0x3a6   :  { %v361_v7 = vadd.f32 %v360_v5, %v1710_v38  ;;  %v1289_v8 = vpop.f32.mrb[3].mxu0 }
 0x3a8   :  { %v365_v9 = vrot.slane %v361_v7, 7 }
 0x3aa   :  { %374 = vrot.lane.b32.xlu1 %v365_v9, %s1554_s3  ;;  %v367_v10 = vadd.f32 %v365_v9, %v1717_v45 }
 0x3ac   :  { %v1192_v12 = vmul.f32 -1.442695, %v367_v10 }
 0x3ae   :  { %1442 = vpow2.f32 %v1192_v12 }
 0x3b8   :  { %v1443_v13 = vpop.eup %1442 }
 0x3b9   :  { %v371_v14 = vadd.f32 1.0, %v1443_v13 }
 0x3bb   :  { %1444 = vrcp.f32 %v371_v14 }
 0x3c5   :  { %v1445_v15 = vpop.eup %1444 }
 0x3c6   :  { %v384_v21 = vsub.f32 1.0, %v1445_v15  ;;  %v392_v24 = vmul.f32 %v1445_v15, %v390_v22 }
 0x41c   :  { %v375_v16 = vpop.permute.xlu1 %374 }
 0x41d   :  { %v377_v17 = vmul.f32 %v1445_v15, %v375_v16 }
 0x41f   :  { %379 = vrot.lane.b32.xlu0 %v377_v17, %s1554_s3 }
 0x491   :  { %v380_v18 = vpop.permute.xlu0 %379 }
 0x492   :  { %v382_v19 = vadd.f32 %v380_v18, %v1717_v45 }
 0x494   :  { %1446 = vtanh.f32 %v382_v19 }
 0x49e   :  { %v1447_v20 = vpop.eup %1446 }
 0x49f   :  { %386 = vrot.lane.b32.xlu1 %v1447_v20, %s1555_s4 }
 0x511   :  { %v387_v23 = vpop.permute.xlu1 %386 }
 0x512   :  { %v389_v25 = vmul.f32 %v387_v23, %v384_v21 }
 0x514   :  { %v393_v26 = vadd.f32 %v392_v24, %v389_v25 }
 0x516   :  { %v395_v27 = vrot.slane %v393_v26, 1  ;;  %v496_v46 = vrot.slane %v393_v26, 7  ;;  %v1030_v51 = vsel %vm79_vm2, %v1724_v1, %v393_v26 }
 0x518   :  { %396 = vrot.lane.b32.xlu0 %v395_v27, %s1555_s4 }
 0x58a   :  { %v397_v28 = vpop.permute.xlu0 %396 }
 0x58b   :  { %1299 = vmatmul.mubr.msk.f32.vlgmr.msra.gmra.mrb[2].mxu1 %vm103_vm1, %v397_v28 }
 0x58c   :  { %1399 = vmatpush3.bf16.msra.mxu1 %v1617_v4  ;;  %1320 = vmatprep.mubr.msk.f32.mxu1 %vm1552_vm0, %v1553_v6 }
 0x58d   :  { %1400 = vmatprep.subr.bf16.mxu1 %v1551_v3 }
 0x590   :  { %1402 = vmatpush3.bf16.msra.mxu1 %v1640_v11 }
 0x591   :  { %1409 = vmatprep.subr.bf16.mxu1 %v1551_v3 }
 0x65e   :  { %v466_v29 = vpop.f32.mrb[2].mxu1 }
 0x65f   :  { %v467_v30 = vadd.f32 %v466_v29, %v1710_v38  ;;  %v1300_v31 = vpop.f32.mrb[3].mxu1 }
 0x661   :  { %v471_v32 = vrot.slane %v467_v30, 6 }
 0x663   :  { %480 = vrot.lane.b32.xlu1 %v471_v32, %s1554_s3  ;;  %v473_v33 = vadd.f32 %v471_v32, %v1717_v45 }
 0x665   :  { %v1194_v34 = vmul.f32 -1.442695, %v473_v33 }
 0x667   :  { %1448 = vpow2.f32 %v1194_v34 }
 0x671   :  { %v1449_v35 = vpop.eup %1448 }
 0x672   :  { %v477_v36 = vadd.f32 1.0, %v1449_v35 }
 0x674   :  { %1450 = vrcp.f32 %v477_v36 }
 0x67e   :  { %v1451_v37 = vpop.eup %1450 }
 0x67f   :  { %v490_v44 = vsub.f32 1.0, %v1451_v37  ;;  %v498_v48 = vmul.f32 %v1451_v37, %v496_v46 }
 0x6d5   :  { %v481_v39 = vpop.permute.xlu1 %480 }
 0x6d6   :  { %v483_v40 = vmul.f32 %v1451_v37, %v481_v39 }
 0x6d8   :  { %485 = vrot.lane.b32.xlu0 %v483_v40, %s1554_s3 }
 0x74a   :  { %v486_v41 = vpop.permute.xlu0 %485 }
 0x74b   :  { %v488_v42 = vadd.f32 %v486_v41, %v1717_v45 }
 0x74d   :  { %1452 = vtanh.f32 %v488_v42 }
 0x757   :  { %v1453_v43 = vpop.eup %1452 }
 0x758   :  { %492 = vrot.lane.b32.xlu1 %v1453_v43, %s1555_s4 }
 0x7ca   :  { %v493_v47 = vpop.permute.xlu1 %492 }
 0x7cb   :  { %v495_v49 = vmul.f32 %v493_v47, %v490_v44 }
 0x7cd   :  { %v499_v50 = vadd.f32 %v498_v48, %v495_v49 }
 0x7cf   :  { %v1031_v52 = vsel %vm81_vm3, %v1030_v51, %v499_v50  ;;  %v501_v53 = vrot.slane %v499_v50, 2  ;;  %v602_v9 = vrot.slane %v499_v50, 7 }
 0x7d1   :  { %502 = vrot.lane.b32.xlu0 %v501_v53, %s1555_s4 }
 0x843   :  { %v503_v54 = vpop.permute.xlu0 %502 }
 0x844   :  { %1310 = vmatmul.mubr.msk.f32.vlgmr.msra.gmra.mrb[4].mxu0 %vm103_vm1, %v503_v54 }
 0x845   :  { %1405 = vmatpush3.bf16.msra.mxu0 %v1617_v4  ;;  %1331 = vmatprep.mubr.msk.f32.mxu0 %vm1552_vm0, %v1553_v6 }
 0x846   :  { %1406 = vmatprep.subr.bf16.mxu0 %v1551_v3 }
 0x849   :  { %1408 = vmatpush3.bf16.msra.mxu0 %v1640_v11 }
 0x84a   :  { %1415 = vmatprep.subr.bf16.mxu0 %v1551_v3 }
 0x917   :  { %v572_v55 = vpop.f32.mrb[4].mxu0 }
 0x918   :  { %v573_v56 = vadd.f32 %v572_v55, %v1710_v38  ;;  %v1311_v57 = vpop.f32.mrb[5].mxu0 }
 0x91a   :  { %v577_v58 = vrot.slane %v573_v56, 5 }
 0x91c   :  { %586 = vrot.lane.b32.xlu1 %v577_v58, %s1554_s3  ;;  %v579_v59 = vadd.f32 %v577_v58, %v1717_v45 }
 0x91e   :  { %v1196_v60 = vmul.f32 -1.442695, %v579_v59 }
 0x920   :  { %1454 = vpow2.f32 %v1196_v60 }
 0x92a   :  { %v1455_v61 = vpop.eup %1454 }
 0x92b   :  { %v583_v62 = vadd.f32 1.0, %v1455_v61 }
 0x92d   :  { %1456 = vrcp.f32 %v583_v62 }
 0x937   :  { %v1457_v63 = vpop.eup %1456 }
 0x938   :  { %v596_v8 = vsub.f32 1.0, %v1457_v63  ;;  %v604_v12 = vmul.f32 %v1457_v63, %v602_v9 }
 0x98e   :  { %v587_v0 = vpop.permute.xlu1 %586 }
 0x98f   :  { %v589_v1 = vmul.f32 %v1457_v63, %v587_v0 }
 0x991   :  { %591 = vrot.lane.b32.xlu0 %v589_v1, %s1554_s3 }
 0xa03   :  { %v592_v2 = vpop.permute.xlu0 %591 }
 0xa04   :  { %v594_v5 = vadd.f32 %v592_v2, %v1717_v45 }
 0xa06   :  { %1458 = vtanh.f32 %v594_v5 }
 0xa10   :  { %v1459_v7 = vpop.eup %1458 }
 0xa11   :  { %598 = vrot.lane.b32.xlu1 %v1459_v7, %s1555_s4 }
 0xa83   :  { %v599_v10 = vpop.permute.xlu1 %598 }
 0xa84   :  { %v601_v13 = vmul.f32 %v599_v10, %v596_v8 }
 0xa86   :  { %v605_v14 = vadd.f32 %v604_v12, %v601_v13 }
 0xa88   :  { %v1032_v15 = vsel %vm83_vm4, %v1031_v52, %v605_v14  ;;  %v607_v16 = vrot.slane %v605_v14, 3  ;;  %v708_v33 = vrot.slane %v605_v14, 7 }
 0xa8a   :  { %608 = vrot.lane.b32.xlu0 %v607_v16, %s1555_s4 }
 0xafc   :  { %v609_v17 = vpop.permute.xlu0 %608 }
 0xafd   :  { %1321 = vmatmul.mubr.msk.f32.vlgmr.msra.gmra.mrb[4].mxu1 %vm103_vm1, %v609_v17 }
 0xafe   :  { %1411 = vmatpush3.bf16.msra.mxu1 %v1617_v4  ;;  %1342 = vmatprep.mubr.msk.f32.mxu1 %vm1552_vm0, %v1553_v6 }
 0xaff   :  { %1412 = vmatprep.subr.bf16.mxu1 %v1551_v3 }
 0xb02   :  { %1414 = vmatpush3.bf16.msra.mxu1 %v1640_v11 }
 0xb03   :  { %1421 = vmatprep.subr.bf16.mxu1 %v1551_v3 }
 0xbd0   :  { %v678_v18 = vpop.f32.mrb[4].mxu1 }
 0xbd1   :  { %v679_v19 = vadd.f32 %v678_v18, %v1710_v38  ;;  %v1322_v20 = vpop.f32.mrb[5].mxu1 }
 0xbd3   :  { %v683_v21 = vrot.slane %v679_v19, 4 }
 0xbd5   :  { %692 = vrot.lane.b32.xlu1 %v683_v21, %s1554_s3  ;;  %v685_v22 = vadd.f32 %v683_v21, %v1717_v45 }
 0xbd7   :  { %v1198_v23 = vmul.f32 -1.442695, %v685_v22 }
 0xbd9   :  { %1460 = vpow2.f32 %v1198_v23 }
 0xbe3   :  { %v1461_v24 = vpop.eup %1460 }
 0xbe4   :  { %v689_v25 = vadd.f32 1.0, %v1461_v24 }
 0xbe6   :  { %1462 = vrcp.f32 %v689_v25 }
 0xbf0   :  { %v1463_v26 = vpop.eup %1462 }
 0xbf1   :  { %v702_v32 = vsub.f32 1.0, %v1463_v26  ;;  %v710_v35 = vmul.f32 %v1463_v26, %v708_v33 }
 0xc47   :  { %v693_v27 = vpop.permute.xlu1 %692 }
 0xc48   :  { %v695_v28 = vmul.f32 %v1463_v26, %v693_v27 }
 0xc4a   :  { %697 = vrot.lane.b32.xlu0 %v695_v28, %s1554_s3 }
 0xcbc   :  { %v698_v29 = vpop.permute.xlu0 %697 }
 0xcbd   :  { %v700_v30 = vadd.f32 %v698_v29, %v1717_v45 }
 0xcbf   :  { %1464 = vtanh.f32 %v700_v30 }
 0xcc9   :  { %v1465_v31 = vpop.eup %1464 }
 0xcca   :  { %704 = vrot.lane.b32.xlu1 %v1465_v31, %s1555_s4 }
 0xd3c   :  { %v705_v34 = vpop.permute.xlu1 %704 }
 0xd3d   :  { %v707_v36 = vmul.f32 %v705_v34, %v702_v32 }
 0xd3f   :  { %v711_v37 = vadd.f32 %v710_v35, %v707_v36 }
 0xd41   :  { %v1033_v39 = vsel %vm85_vm5, %v1032_v15, %v711_v37  ;;  %v713_v40 = vrot.slane %v711_v37, 4  ;;  %v814_v56 = vrot.slane %v711_v37, 7 }
 0xd43   :  { %714 = vrot.lane.b32.xlu0 %v713_v40, %s1555_s4  ;;  %v1038_v40 = vld [vmem:[%s1874_s5 + $0x8] sm:$0xff] }
 0xdb5   :  { %v715_v41 = vpop.permute.xlu0 %714 }
 0xdb6   :  { %1332 = vmatmul.mubr.msk.f32.vlgmr.msra.gmra.mrb[6].mxu0 %vm103_vm1, %v715_v41  ;;  %v1039_v41 = vld [vmem:[%s1874_s5 + $0x10] sm:$0xff] }
 0xdb7   :  { %1417 = vmatpush3.bf16.msra.mxu0 %v1617_v4  ;;  %1353 = vmatprep.mubr.msk.f32.mxu0 %vm1552_vm0, %v1553_v6 }
 0xdb8   :  { %1418 = vmatprep.subr.bf16.mxu0 %v1551_v3 }
 0xdbb   :  { %1420 = vmatpush3.bf16.msra.mxu0 %v1640_v11 }
 0xe89   :  { %v784_v42 = vpop.f32.mrb[6].mxu0 }
 0xe8a   :  { %v785_v43 = vadd.f32 %v784_v42, %v1710_v38  ;;  %v1333_v44 = vpop.f32.mrb[7].mxu0 }
 0xe8c   :  { %v789_v46 = vrot.slane %v785_v43, 3  ;;  %v1040_v43 = vld [vmem:[%s1874_s5 + $0x18] sm:$0xff] }
 0xe8e   :  { %798 = vrot.lane.b32.xlu1 %v789_v46, %s1554_s3  ;;  %v791_v47 = vadd.f32 %v789_v46, %v1717_v45 }
 0xe90   :  { %v1200_v48 = vmul.f32 -1.442695, %v791_v47 }
 0xe92   :  { %1466 = vpow2.f32 %v1200_v48 }
 0xe9c   :  { %v1467_v49 = vpop.eup %1466 }
 0xe9d   :  { %v795_v4 = vadd.f32 1.0, %v1467_v49 }
 0xe9f   :  { %1468 = vrcp.f32 %v795_v4 }
 0xea9   :  { %v1469_v50 = vpop.eup %1468 }
 0xeaa   :  { %v808_v55 = vsub.f32 1.0, %v1469_v50  ;;  %v816_v58 = vmul.f32 %v1469_v50, %v814_v56 }
 0xf00   :  { %v799_v51 = vpop.permute.xlu1 %798 }
 0xf01   :  { %v801_v52 = vmul.f32 %v1469_v50, %v799_v51 }
 0xf03   :  { %803 = vrot.lane.b32.xlu0 %v801_v52, %s1554_s3 }
 0xf75   :  { %v804_v11 = vpop.permute.xlu0 %803 }
 0xf76   :  { %v806_v53 = vadd.f32 %v804_v11, %v1717_v45 }
 0xf78   :  { %1470 = vtanh.f32 %v806_v53 }
 0xf82   :  { %v1471_v54 = vpop.eup %1470 }
 0xf83   :  { %810 = vrot.lane.b32.xlu1 %v1471_v54, %s1555_s4 }
 0xff5   :  { %v811_v57 = vpop.permute.xlu1 %810 }
 0xff6   :  { %v813_v59 = vmul.f32 %v811_v57, %v808_v55 }
 0xff8   :  { %v817_v60 = vadd.f32 %v816_v58, %v813_v59 }
 0xffa   :  { %v819_v61 = vrot.slane %v817_v60, 5  ;;  %v1034_v62 = vsel %vm87_vm6, %v1033_v39, %v817_v60  ;;  %v920_v18 = vrot.slane %v817_v60, 7 }
 0xffc   :  { %820 = vrot.lane.b32.xlu0 %v819_v61, %s1555_s4 }
0x106e   :  { %v821_v63 = vpop.permute.xlu0 %820 }
0x106f   :  { %1343 = vmatmul.mubr.msk.f32.vlgmr.msra.gmra.mrb[6].mxu1 %vm103_vm1, %v821_v63 }
0x1070   :  { %1364 = vmatprep.mubr.msk.f32.mxu1 %vm1552_vm0, %v1553_v6 }
0x1142   :  { %v890_v0 = vpop.f32.mrb[6].mxu1 }
0x1143   :  { %v891_v1 = vadd.f32 %v890_v0, %v1710_v38  ;;  %v1344_v2 = vpop.f32.mrb[7].mxu1 }
0x1145   :  { %v895_v5 = vrot.slane %v891_v1, 2 }
0x1147   :  { %904 = vrot.lane.b32.xlu1 %v895_v5, %s1554_s3  ;;  %v897_v7 = vadd.f32 %v895_v5, %v1717_v45 }
0x1149   :  { %v1202_v8 = vmul.f32 -1.442695, %v897_v7 }
0x114b   :  { %1472 = vpow2.f32 %v1202_v8 }
0x1155   :  { %v1473_v9 = vpop.eup %1472 }
0x1156   :  { %v901_v10 = vadd.f32 1.0, %v1473_v9 }
0x1158   :  { %1474 = vrcp.f32 %v901_v10 }
0x1162   :  { %v1475_v12 = vpop.eup %1474 }
0x1163   :  { %v914_v17 = vsub.f32 1.0, %v1475_v12  ;;  %v922_v20 = vmul.f32 %v1475_v12, %v920_v18 }
0x11b9   :  { %v905_v13 = vpop.permute.xlu1 %904 }
0x11ba   :  { %v907_v14 = vmul.f32 %v1475_v12, %v905_v13 }
0x11bc   :  { %909 = vrot.lane.b32.xlu0 %v907_v14, %s1554_s3 }
0x122e   :  { %v910_v6 = vpop.permute.xlu0 %909 }
0x122f   :  { %v912_v15 = vadd.f32 %v910_v6, %v1717_v45 }
0x1231   :  { %1476 = vtanh.f32 %v912_v15 }
0x123b   :  { %v1477_v16 = vpop.eup %1476 }
0x123c   :  { %916 = vrot.lane.b32.xlu1 %v1477_v16, %s1555_s4 }
0x12ae   :  { %v917_v19 = vpop.permute.xlu1 %916 }
0x12af   :  { %v919_v21 = vmul.f32 %v917_v19, %v914_v17 }
0x12b1   :  { %v923_v22 = vadd.f32 %v922_v20, %v919_v21 }
0x12b3   :  { %v925_v23 = vrot.slane %v923_v22, 6  ;;  %v1035_v24 = vsel %vm89_vm7, %v1034_v62, %v923_v22  ;;  %v1026_v47 = vrot.slane %v923_v22, 7 }
0x12b5   :  { %926 = vrot.lane.b32.xlu0 %v925_v23, %s1555_s4 }
0x1327   :  { %v927_v25 = vpop.permute.xlu0 %926 }
0x1328   :  { %1354 = vmatmul.mubr.msk.f32.vlgmr.msra.gmra.mrb[8].mxu0 %vm103_vm1, %v927_v25 }
0x13fb   :  { %v996_v26 = vpop.f32.mrb[8].mxu0 }
0x13fc   :  { %v997_v27 = vadd.f32 %v996_v26, %v1710_v38  ;;  %v1355_v28 = vpop.f32.mrb[9].mxu0  ;;  %v1037_v38 = vld [vmem:[%s1874_s5] sm:$0xff] }
0x13fd   :  { %v1422_v42 = vpack.c.bf16 %v1038_v40, %v1037_v38 }
0x13fe   :  { %v1001_v29 = vrot.slane %v997_v27, 1 }
0x13ff   :  { %1423 = vmatpush3.bf16.msra.mxu1 %v1422_v42 }
0x1400   :  { %1010 = vrot.lane.b32.xlu1 %v1001_v29, %s1554_s3  ;;  %v1003_v30 = vadd.f32 %v1001_v29, %v1717_v45  ;;  %1424 = vmatprep.subr.bf16.mxu1 %v1551_v3  ;;  %v1205_v3 = vld [vmem:[%s1875_s6] ss:$0 sm:$0xff]  ;;  %s1160_s6 = sshll.u32 %s1557_s23, 4  ;;  %s1161_s6 = int_to_ptr.vmem [resolvable:$true] %s1160_s6 }
0x1401   :  { %s1500_s24 = scalar_lea.vmem %s1161_s6, 16  ;;  %s1504_s25 = scalar_lea.vmem %s1161_s6, 32 }
0x1402   :  { %v1204_v31 = vmul.f32 -1.442695, %v1003_v30  ;;  %p1501_p5 = scmp.ne.s32.totalorder %s1161_s6, %s1500_s24  ;;  %p1505_p6 = scmp.lt.s32.totalorder %s1161_s6, %s1161_s6 }
0x1403   :  { %p1506_p7 = scmp.lt.s32.totalorder %s1504_s25, %s1500_s24 }
0x1404   :  { %1478 = vpow2.f32 %v1204_v31 }
0x1405   :  { %p1507_p8 = por %p1506_p7, %p1505_p6 }
0x1407   :  { %p1508_p9 = pnand %p1507_p8, %p1501_p5 }
0x140e   :  { %v1479_v32 = vpop.eup %1478 }
0x140f   :  { %v1007_v33 = vadd.f32 1.0, %v1479_v32 }
0x1411   :  { %1480 = vrcp.f32 %v1007_v33 }
0x141b   :  { %v1481_v34 = vpop.eup %1480 }
0x141c   :  { %v1020_v46 = vsub.f32 1.0, %v1481_v34  ;;  %v1028_v49 = vmul.f32 %v1481_v34, %v1026_v47 }
0x1472   :  { %v1011_v35 = vpop.permute.xlu1 %1010 }
0x1473   :  { %v1013_v36 = vmul.f32 %v1481_v34, %v1011_v35 }
0x1475   :  { %1015 = vrot.lane.b32.xlu0 %v1013_v36, %s1554_s3 }
0x14e7   :  { %v1016_v37 = vpop.permute.xlu0 %1015 }
0x14e8   :  { %v1018_v39 = vadd.f32 %v1016_v37, %v1717_v45  ;;  %v1425_v45 = vpack.c.bf16 %v1040_v43, %v1039_v41 }
0x14ea   :  { %1482 = vtanh.f32 %v1018_v39  ;;  %1426 = vmatpush3.bf16.msra.mxu1 %v1425_v45 }
0x14f4   :  { %v1483_v44 = vpop.eup %1482 }
0x14f5   :  { %1022 = vrot.lane.b32.xlu1 %v1483_v44, %s1555_s4 }
0x1567   :  { %v1023_v48 = vpop.permute.xlu1 %1022 }
0x1568   :  { %v1025_v4 = vmul.f32 %v1023_v48, %v1020_v46 }
0x156a   :  { %v1029_v50 = vadd.f32 %v1028_v49, %v1025_v4 }
0x156c   :  { %v1036_v51 = vsel %vm91_vm8, %v1035_v24, %v1029_v50 }
0x156d   :  { %1049 = vrot.lane.b32.xlu0 %v1036_v51, %s1555_s4 }
0x15df   :  { %v1050_v52 = vpop.permute.xlu0 %1049 }
0x15e0   :  { %1365 = vmatmul.mubr.msk.f32.vlgmr.msra.gmra.mrb[8].mxu1 %vm103_vm1, %v1050_v52 }
0x16b3   :  { %v1119_v11 = vpop.f32.mrb[8].mxu1 }
0x16b4   :  { %v1120_v53 = vadd.f32 %v1205_v3, %v1119_v11  ;;  %v1366_v54 = vpop.f32.mrb[9].mxu1 }
0x16b6   :  { %v1124_v55 = vsel %vm1123_vm9, %v1120_v53, -inf }
0x16b7   :  { %1125 = vmax.xlane.f32.xlu1 %v1124_v55 }
0x1744   :  { %v1126_v56 = vpop.xlane.xlu1 %1125 }
0x1745   :  { %v1127_v57 = vsub.f32 %v1120_v53, %v1126_v56 }
0x1747   :  { %v1128_v58 = vmul.f32 1.442695, %v1127_v57 }
0x1749   :  { %1484 = vpow2.f32 %v1128_v58 }
0x1753   :  { %v1485_v59 = vpop.eup %1484 }
0x1754   :  { %v1130_v60 = vsel %vm1123_vm9, %v1485_v59, 0.0 }
0x1755   :  { %1131 = vadd.xlane.f32.xlu0 %v1130_v60 }
0x176b   :  { %1139 = vrot.lane.b32.xlu0 %v1029_v50, %s1555_s4 }
0x17e2   :  { %v1132_v61 = vpop.xlane.xlu0 %1131 }
0x17e3   :  { %1486 = vlog2.f32 %v1132_v61 }
0x17e6   :  { %v1140_v62 = vpop.permute.xlu0 %1139 }
0x17e7   :  { %1143 = vst.msk [vmem:[#allocation6 - $0x7] sm:$0x80] %vm1142_vm10, %v1140_v62 }
0x17e8   :  { %1511 = shalt.err (!%p1508_p9)
}
0x17e9   :  { %s1512_s10 = scalar_lea.hbm %s1877_s8, 16 }
0x17ea   :  { %p1513_p10 = scmp.ne.s32.totalorder %s1877_s8, %s1512_s10  ;;  %p1516_p11 = scmp.lt.u32.totalorder %s1512_s10, %s1877_s8 }
0x17ec   :  { %p1518_p12 = pnand %p1516_p11, %p1513_p10 }
0x17ee   :  { %1521 = shalt.err (!%p1518_p12)
}
0x17ef   :  { %1163 = dma.vmem_to_hbm [thread:$0]  %s1161_s6, 16, %s1877_s8, [#allocation7]   ;;  %v1487_v63 = vpop.eup %1486 }
0x17f0   :  { %v1134_v0 = vmul.f32 0.6931472, %v1487_v63  ;;  %s1558_s30 = smov [#allocation4]  }
0x17f1   :  { %s1150_s3 = sshll.u32 %s1558_s30, 4  ;;  %s1151_s3 = int_to_ptr.vmem [resolvable:$true] %s1150_s3 }
0x17f2   :  { %v1135_v1 = vsub.f32 %v1127_v57, %v1134_v0  ;;  %s1522_s9 = scalar_lea.vmem %s1151_s3, 128  ;;  %p1527_p0 = scmp.lt.s32.totalorder %s1151_s3, %s1151_s3 }
0x17f3   :  { %p1523_p13 = scmp.ne.s32.totalorder %s1151_s3, %s1522_s9  ;;  %p1528_p1 = scmp.lt.s32.totalorder %s1522_s9, %s1522_s9 }
0x17f4   :  { %v1136_v2 = vsel %vm1123_vm9, %v1135_v1, 0.0 }
0x17f5   :  { %1137 = vst [vmem:[#allocation4] sm:$0xff] %v1136_v2  ;;  %p1529_p2 = por %p1528_p1, %p1527_p0 }
0x17f7   :  { %p1530_p3 = pnand %p1529_p2, %p1523_p13 }
0x17f9   :  { %1533 = shalt.err (!%p1530_p3)
}
0x17fa   :  { %s1534_s8 = scalar_lea.hbm %s1876_s7, 128 }
0x17fb   :  { %p1535_p4 = scmp.ne.s32.totalorder %s1876_s7, %s1534_s8  ;;  %p1538_p5 = scmp.lt.u32.totalorder %s1534_s8, %s1876_s7 }
0x17fd   :  { %p1540_p6 = pnand %p1538_p5, %p1535_p4 }
0x17ff   :  { %1543 = shalt.err (!%p1540_p6)
}
0x1800   :  { %1153 = dma.vmem_to_hbm [thread:$0]  %s1151_s3, 128, %s1876_s7, [#allocation5]  }
0x1801   :  { %1546 = dma.done.wait [#allocation5], 128  }
0x1802   :  { %1547 = vsyncadd [#allocation5], 4294967168 }
0x1803   :  { %1548 = dma.done.wait [#allocation7], 16  }
0x1804   :  { %1549 = vsyncadd [#allocation7], 4294967280 }
0x1805   :  { %1170 = vsyncpa [#allocation5], 1 }
0x1806   :  { %1171 = vsyncpa [#allocation7], 1 }

</bundles_post_ra>
